<compile_context>
chip_gen: v6e
topology: v6e:2x2x1
jax: 0.10.0
libtpu: 0.0.40
codegen_flags: <defaults>
</compile_context>

<pallas_src>
import numpy as np
import jax
import jax.numpy as jnp
from jax.experimental import pallas as pl
from jax.experimental.pallas import tpu as pltpu


def create_high_pass_kernel(kernel_size: int, sigma: float, in_channels: int) -> np.ndarray:
    """Deterministic parameter init, identical to GaussianFilter.create_high_pass_kernel."""
    kernel = np.zeros((kernel_size, kernel_size))
    pad = kernel_size // 2
    for x in range(-pad, -pad + kernel_size):
        for y in range(-pad, -pad + kernel_size):
            kernel[y + pad, x + pad] = np.exp(-(x ** 2 + y ** 2) / (2 * sigma ** 2))
    kernel /= sigma ** 2 * np.pi * 2
    kernel /= kernel.sum()
    identity_kernel = np.zeros((kernel_size, kernel_size))
    identity_kernel[pad, pad] = 1
    high_pass = identity_kernel - kernel
    high_pass /= -high_pass[pad, pad]
    # PyTorch shape is (C, 1, k, k); depthwise conv only needs (C, k, k).
    return np.tile(high_pass[None, :, :], (in_channels, 1, 1)).astype(np.float32)


def gaussian_filter_forward(x: jax.Array, kernel: jax.Array, kernel_size: int) -> jax.Array:
    """F.conv2d(x, kernel, padding=k//2, groups=C) as a Pallas TPU kernel."""
    N, C, H, W = x.shape
    K = kernel_size
    pad = K // 2
    Hp, Wp = H + 2 * pad, W + 2 * pad
    Ws = C * Wp            # folded slab width: channels side by side, each with its own zero pad
    Wacc = Ws - 2 * pad    # accumulator width: channel c's output lives at columns [c*Wp, c*Wp + W)

    # Tiny (K*K, Wacc) weight slab: column m belongs to channel m // Wp, so each tap becomes a
    # plain (1, Wacc) vector multiply while keeping per-channel weights.
    kern2 = kernel.reshape(C, K * K).astype(jnp.float32)
    ch_of_col = jnp.arange(Wacc) // Wp                      # (Wacc,)
    wslab = jnp.transpose(kern2[ch_of_col, :])              # (K*K, Wacc)

    def dw_conv_kernel(wslab_ref, x_ref, o_ref, s_ref):
        # x_ref / o_ref: (C, H, W) block for batch n;  s_ref: (Hp, C*Wp) folded, padded slab.
        # Fused zero-padding: zero the slab, then scatter the unpadded input into the interior
        # of each channel's segment (x is read from HBM exactly once by the block DMA).
        s_ref[...] = jnp.zeros_like(s_ref)
        for c in range(C):
            s_ref[pad:pad + H, c * Wp + pad:c * Wp + pad + W] = x_ref[c].astype(jnp.float32)

        w_all = wslab_ref[...]                               # (K*K, Wacc), single VMEM load
        acc = jnp.zeros((H, Wacc), jnp.float32)
        for dy in range(K):
            row = s_ref[dy:dy + H, :]                        # one (H, Ws) row-slab load per dy
            for dx in range(K):
                w_row = w_all[dy * K + dx:dy * K + dx + 1, :]       # (1, Wacc)
                acc = acc + w_row * row[:, dx:dx + Wacc]            # lane shift (XLU) + FMA (VPU)

        # Unfold channels back into the NCHW output block (single store per channel).
        for c in range(C):
            o_ref[c, :, :] = acc[:, c * Wp:c * Wp + W].astype(o_ref.dtype)

    return pl.pallas_call(
        dw_conv_kernel,
        out_shape=jax.ShapeDtypeStruct((N, C, H, W), x.dtype),
        grid=(N,),
        in_specs=[
            # weight slab: whole tiny array resident in VMEM, same block every step
            pl.BlockSpec((K * K, Wacc), lambda n: (0, 0)),
            # one full (C, H, W) unpadded slab per grid step (batch dim squeezed away)
            pl.BlockSpec((pl.Squeezed(), C, H, W), lambda n: (n, 0, 0, 0)),
        ],
        out_specs=pl.BlockSpec((pl.Squeezed(), C, H, W), lambda n: (n, 0, 0, 0)),
        scratch_shapes=[pltpu.VMEM((Hp, Ws), jnp.float32)],
        compiler_params=pltpu.CompilerParams(dimension_semantics=("parallel",)),
    )(wslab, x)


def _reference_forward(x, kernel, kernel_size):
    """Pure-JAX reference: grouped (depthwise) conv2d, same padding convention."""
    C = x.shape[1]
    w = kernel.reshape(C, 1, kernel_size, kernel_size)  # OIHW with I=1, groups=C
    return jax.lax.conv_general_dilated(
        x.astype(jnp.float32), w.astype(jnp.float32),
        window_strides=(1, 1),
        padding=[(kernel_size // 2, kernel_size // 2)] * 2,
        dimension_numbers=("NCHW", "OIHW", "NCHW"),
        feature_group_count=C,
    )


if __name__ == "__main__":
    kernel_size = 3
    sigma = 1.0
    in_channels = 3
    N, H, W = 2, 16, 16

    key = jax.random.PRNGKey(0)
    x = jax.random.normal(key, (N, in_channels, H, W), dtype=jnp.float32)

    kern_np = create_high_pass_kernel(kernel_size, sigma, in_channels)
    kern = jnp.asarray(kern_np)

    out = gaussian_filter_forward(x, kern, kernel_size)
    out = jax.block_until_ready(out)

    ref = _reference_forward(x, kern, kernel_size)
    np.testing.assert_allclose(np.asarray(out), np.asarray(ref), rtol=1e-5, atol=1e-5)

    print("KERNEL_OK")
</pallas_src>

<mosaic_0001>
module attributes {stable_mosaic.version = 11 : i64} {
  func.func @dw_conv_kernel(%arg0: i32, %arg1: memref<9x52xf32, #tpu.memory_space<vmem>>, %arg2: memref<1x3x16x16xf32, #tpu.memory_space<vmem>>, %arg3: memref<1x3x16x16xf32, #tpu.memory_space<vmem>>, %arg4: memref<18x54xf32, #tpu.memory_space<vmem>>) attributes {dimension_semantics = [#tpu.dimension_semantics<parallel>], iteration_bounds = array<i64: 2>, scalar_prefetch = 0 : i64, scratch_operands = 1 : i64, tpu.core_type = #tpu.core_type<tc>, window_params = [{pipeline_mode = #tpu.pipeline_mode<synchronous>, transform_indices = @transform_0, window_bounds = array<i64: 9, 52>}, {transform_indices = @transform_1, window_bounds = array<i64: 1, 3, 16, 16>}, {transform_indices = @transform_2, window_bounds = array<i64: 1, 3, 16, 16>}]} {
    %cst = arith.constant 0.000000e+00 : f32
    %0 = vector.broadcast %cst : f32 to vector<18x54xf32>
    %c0 = arith.constant 0 : index
    %c0_0 = arith.constant 0 : index
    %1 = vector.load %arg4[%c0, %c0_0] : memref<18x54xf32, #tpu.memory_space<vmem>>, vector<18x54xf32>
    tpu.vector_store %arg4[%c0, %c0_0], %0 {strides = array<i32>} : memref<18x54xf32, #tpu.memory_space<vmem>>, vector<18x54xf32>,
    %c0_1 = arith.constant 0 : index
    %c0_2 = arith.constant 0 : index
    %c0_3 = arith.constant 0 : index
    %c0_4 = arith.constant 0 : index
    %2 = vector.load %arg2[%c0_1, %c0_2, %c0_3, %c0_4] : memref<1x3x16x16xf32, #tpu.memory_space<vmem>>, vector<1x1x16x16xf32>
    %3 = vector.shape_cast %2 : vector<1x1x16x16xf32> to vector<16x16xf32>
    %c1 = arith.constant 1 : index
    %c1_5 = arith.constant 1 : index
    %4 = vector.load %arg4[%c1, %c1_5] : memref<18x54xf32, #tpu.memory_space<vmem>>, vector<16x16xf32>
    tpu.vector_store %arg4[%c1, %c1_5], %3 {strides = array<i32>} : memref<18x54xf32, #tpu.memory_space<vmem>>, vector<16x16xf32>,
    %c0_6 = arith.constant 0 : index
    %c1_7 = arith.constant 1 : index
    %c0_8 = arith.constant 0 : index
    %c0_9 = arith.constant 0 : index
    %5 = vector.load %arg2[%c0_6, %c1_7, %c0_8, %c0_9] : memref<1x3x16x16xf32, #tpu.memory_space<vmem>>, vector<1x1x16x16xf32>
    %6 = vector.shape_cast %5 : vector<1x1x16x16xf32> to vector<16x16xf32>
    %c1_10 = arith.constant 1 : index
    %c19 = arith.constant 19 : index
    %7 = vector.load %arg4[%c1_10, %c19] : memref<18x54xf32, #tpu.memory_space<vmem>>, vector<16x16xf32>
    tpu.vector_store %arg4[%c1_10, %c19], %6 {strides = array<i32>} : memref<18x54xf32, #tpu.memory_space<vmem>>, vector<16x16xf32>,
    %c0_11 = arith.constant 0 : index
    %c2 = arith.constant 2 : index
    %c0_12 = arith.constant 0 : index
    %c0_13 = arith.constant 0 : index
    %8 = vector.load %arg2[%c0_11, %c2, %c0_12, %c0_13] : memref<1x3x16x16xf32, #tpu.memory_space<vmem>>, vector<1x1x16x16xf32>
    %9 = vector.shape_cast %8 : vector<1x1x16x16xf32> to vector<16x16xf32>
    %c1_14 = arith.constant 1 : index
    %c37 = arith.constant 37 : index
    %10 = vector.load %arg4[%c1_14, %c37] : memref<18x54xf32, #tpu.memory_space<vmem>>, vector<16x16xf32>
    tpu.vector_store %arg4[%c1_14, %c37], %9 {strides = array<i32>} : memref<18x54xf32, #tpu.memory_space<vmem>>, vector<16x16xf32>,
    %c0_15 = arith.constant 0 : index
    %c0_16 = arith.constant 0 : index
    %11 = vector.load %arg1[%c0_15, %c0_16] : memref<9x52xf32, #tpu.memory_space<vmem>>, vector<9x52xf32>
    %cst_17 = arith.constant 0.000000e+00 : f32
    %12 = vector.broadcast %cst_17 : f32 to vector<16x52xf32>
    %c0_18 = arith.constant 0 : index
    %c0_19 = arith.constant 0 : index
    %13 = vector.load %arg4[%c0_18, %c0_19] : memref<18x54xf32, #tpu.memory_space<vmem>>, vector<16x54xf32>
    %14 = vector.extract_strided_slice %11 {offsets = [0, 0], sizes = [1, 52], strides = [1, 1]} : vector<9x52xf32> to vector<1x52xf32>
    %15 = vector.extract_strided_slice %13 {offsets = [0, 0], sizes = [16, 52], strides = [1, 1]} : vector<16x54xf32> to vector<16x52xf32>
    %16 = vector.broadcast %14 : vector<1x52xf32> to vector<16x52xf32>
    %17 = arith.mulf %16, %15 : vector<16x52xf32>
    %18 = arith.addf %12, %17 : vector<16x52xf32>
    %19 = vector.extract_strided_slice %11 {offsets = [1, 0], sizes = [1, 52], strides = [1, 1]} : vector<9x52xf32> to vector<1x52xf32>
    %20 = vector.extract_strided_slice %13 {offsets = [0, 1], sizes = [16, 52], strides = [1, 1]} : vector<16x54xf32> to vector<16x52xf32>
    %21 = vector.broadcast %19 : vector<1x52xf32> to vector<16x52xf32>
    %22 = arith.mulf %21, %20 : vector<16x52xf32>
    %23 = arith.addf %18, %22 : vector<16x52xf32>
    %24 = vector.extract_strided_slice %11 {offsets = [2, 0], sizes = [1, 52], strides = [1, 1]} : vector<9x52xf32> to vector<1x52xf32>
    %25 = vector.extract_strided_slice %13 {offsets = [0, 2], sizes = [16, 52], strides = [1, 1]} : vector<16x54xf32> to vector<16x52xf32>
    %26 = vector.broadcast %24 : vector<1x52xf32> to vector<16x52xf32>
    %27 = arith.mulf %26, %25 : vector<16x52xf32>
    %28 = arith.addf %23, %27 : vector<16x52xf32>
    %c1_20 = arith.constant 1 : index
    %c0_21 = arith.constant 0 : index
    %29 = vector.load %arg4[%c1_20, %c0_21] : memref<18x54xf32, #tpu.memory_space<vmem>>, vector<16x54xf32>
    %30 = vector.extract_strided_slice %11 {offsets = [3, 0], sizes = [1, 52], strides = [1, 1]} : vector<9x52xf32> to vector<1x52xf32>
    %31 = vector.extract_strided_slice %29 {offsets = [0, 0], sizes = [16, 52], strides = [1, 1]} : vector<16x54xf32> to vector<16x52xf32>
    %32 = vector.broadcast %30 : vector<1x52xf32> to vector<16x52xf32>
    %33 = arith.mulf %32, %31 : vector<16x52xf32>
    %34 = arith.addf %28, %33 : vector<16x52xf32>
    %35 = vector.extract_strided_slice %11 {offsets = [4, 0], sizes = [1, 52], strides = [1, 1]} : vector<9x52xf32> to vector<1x52xf32>
    %36 = vector.extract_strided_slice %29 {offsets = [0, 1], sizes = [16, 52], strides = [1, 1]} : vector<16x54xf32> to vector<16x52xf32>
    %37 = vector.broadcast %35 : vector<1x52xf32> to vector<16x52xf32>
    %38 = arith.mulf %37, %36 : vector<16x52xf32>
    %39 = arith.addf %34, %38 : vector<16x52xf32>
    %40 = vector.extract_strided_slice %11 {offsets = [5, 0], sizes = [1, 52], strides = [1, 1]} : vector<9x52xf32> to vector<1x52xf32>
    %41 = vector.extract_strided_slice %29 {offsets = [0, 2], sizes = [16, 52], strides = [1, 1]} : vector<16x54xf32> to vector<16x52xf32>
    %42 = vector.broadcast %40 : vector<1x52xf32> to vector<16x52xf32>
    %43 = arith.mulf %42, %41 : vector<16x52xf32>
    %44 = arith.addf %39, %43 : vector<16x52xf32>
    %c2_22 = arith.constant 2 : index
    %c0_23 = arith.constant 0 : index
    %45 = vector.load %arg4[%c2_22, %c0_23] : memref<18x54xf32, #tpu.memory_space<vmem>>, vector<16x54xf32>
    %46 = vector.extract_strided_slice %11 {offsets = [6, 0], sizes = [1, 52], strides = [1, 1]} : vector<9x52xf32> to vector<1x52xf32>
    %47 = vector.extract_strided_slice %45 {offsets = [0, 0], sizes = [16, 52], strides = [1, 1]} : vector<16x54xf32> to vector<16x52xf32>
    %48 = vector.broadcast %46 : vector<1x52xf32> to vector<16x52xf32>
    %49 = arith.mulf %48, %47 : vector<16x52xf32>
    %50 = arith.addf %44, %49 : vector<16x52xf32>
    %51 = vector.extract_strided_slice %11 {offsets = [7, 0], sizes = [1, 52], strides = [1, 1]} : vector<9x52xf32> to vector<1x52xf32>
    %52 = vector.extract_strided_slice %45 {offsets = [0, 1], sizes = [16, 52], strides = [1, 1]} : vector<16x54xf32> to vector<16x52xf32>
    %53 = vector.broadcast %51 : vector<1x52xf32> to vector<16x52xf32>
    %54 = arith.mulf %53, %52 : vector<16x52xf32>
    %55 = arith.addf %50, %54 : vector<16x52xf32>
    %56 = vector.extract_strided_slice %11 {offsets = [8, 0], sizes = [1, 52], strides = [1, 1]} : vector<9x52xf32> to vector<1x52xf32>
    %57 = vector.extract_strided_slice %45 {offsets = [0, 2], sizes = [16, 52], strides = [1, 1]} : vector<16x54xf32> to vector<16x52xf32>
    %58 = vector.broadcast %56 : vector<1x52xf32> to vector<16x52xf32>
    %59 = arith.mulf %58, %57 : vector<16x52xf32>
    %60 = arith.addf %55, %59 : vector<16x52xf32>
    %61 = vector.extract_strided_slice %60 {offsets = [0, 0], sizes = [16, 16], strides = [1, 1]} : vector<16x52xf32> to vector<16x16xf32>
    %c0_24 = arith.constant 0 : index
    %c0_25 = arith.constant 0 : index
    %c0_26 = arith.constant 0 : index
    %c0_27 = arith.constant 0 : index
    %62 = vector.load %arg3[%c0_24, %c0_25, %c0_26, %c0_27] : memref<1x3x16x16xf32, #tpu.memory_space<vmem>>, vector<1x1x16x16xf32>
    %63 = vector.shape_cast %62 : vector<1x1x16x16xf32> to vector<16x16xf32>
    %64 = vector.shape_cast %61 : vector<16x16xf32> to vector<1x1x16x16xf32>
    tpu.vector_store %arg3[%c0_24, %c0_25, %c0_26, %c0_27], %64 {strides = array<i32>} : memref<1x3x16x16xf32, #tpu.memory_space<vmem>>, vector<1x1x16x16xf32>,
    %65 = vector.extract_strided_slice %60 {offsets = [0, 18], sizes = [16, 16], strides = [1, 1]} : vector<16x52xf32> to vector<16x16xf32>
    %c0_28 = arith.constant 0 : index
    %c1_29 = arith.constant 1 : index
    %c0_30 = arith.constant 0 : index
    %c0_31 = arith.constant 0 : index
    %66 = vector.load %arg3[%c0_28, %c1_29, %c0_30, %c0_31] : memref<1x3x16x16xf32, #tpu.memory_space<vmem>>, vector<1x1x16x16xf32>
    %67 = vector.shape_cast %66 : vector<1x1x16x16xf32> to vector<16x16xf32>
    %68 = vector.shape_cast %65 : vector<16x16xf32> to vector<1x1x16x16xf32>
    tpu.vector_store %arg3[%c0_28, %c1_29, %c0_30, %c0_31], %68 {strides = array<i32>} : memref<1x3x16x16xf32, #tpu.memory_space<vmem>>, vector<1x1x16x16xf32>,
    %69 = vector.extract_strided_slice %60 {offsets = [0, 36], sizes = [16, 16], strides = [1, 1]} : vector<16x52xf32> to vector<16x16xf32>
    %c0_32 = arith.constant 0 : index
    %c2_33 = arith.constant 2 : index
    %c0_34 = arith.constant 0 : index
    %c0_35 = arith.constant 0 : index
    %70 = vector.load %arg3[%c0_32, %c2_33, %c0_34, %c0_35] : memref<1x3x16x16xf32, #tpu.memory_space<vmem>>, vector<1x1x16x16xf32>
    %71 = vector.shape_cast %70 : vector<1x1x16x16xf32> to vector<16x16xf32>
    %72 = vector.shape_cast %69 : vector<16x16xf32> to vector<1x1x16x16xf32>
    tpu.vector_store %arg3[%c0_32, %c2_33, %c0_34, %c0_35], %72 {strides = array<i32>} : memref<1x3x16x16xf32, #tpu.memory_space<vmem>>, vector<1x1x16x16xf32>,
    return
  }
  func.func @transform_0(%arg0: i32) -> (i32, i32) {
    %c0_i32 = arith.constant 0 : i32
    %c0_i32_0 = arith.constant 0 : i32
    %c0_i32_1 = arith.constant 0 : i32
    return %c0_i32, %c0_i32_0 : i32, i32
  }
  func.func @transform_1(%arg0: i32) -> (i32, i32, i32, i32) {
    %c0_i32 = arith.constant 0 : i32
    %c0_i32_0 = arith.constant 0 : i32
    %c0_i32_1 = arith.constant 0 : i32
    %c0_i32_2 = arith.constant 0 : i32
    return %arg0, %c0_i32, %c0_i32_0, %c0_i32_1 : i32, i32, i32, i32
  }
  func.func @transform_2(%arg0: i32) -> (i32, i32, i32, i32) {
    %c0_i32 = arith.constant 0 : i32
    %c0_i32_0 = arith.constant 0 : i32
    %c0_i32_1 = arith.constant 0 : i32
    %c0_i32_2 = arith.constant 0 : i32
    return %arg0, %c0_i32, %c0_i32_0, %c0_i32_1 : i32, i32, i32, i32
  }
}

</mosaic_0001>

<bundles_post_ra>
// kernel: tpu_custom_call.1
= control target key start
LH: loop header
LB: loop body
LE: loop exit
PB: predicated region body
PF: predicated region fallthrough
CT: control target
= control target key end

     0   :  { %7 = vsyncpa [#allocation4], 0  ;;  %s906_s0 = inlined_call_operand.hbm [shape: f32[9,52], index: 0, kind: input, shape index: {}]   ;;  %s907_s1 = inlined_call_operand.hbm [shape: f32[2,3,16,16], index: 1, kind: input, shape index: {}]   ;;  %s908_s2 = inlined_call_operand.hbm [shape: f32[2,3,16,16], index: 2, kind: output, shape index: {}]  }
   0x1   :  { %8 = vsyncpa [#allocation7], 0 }
   0x2   :  { %10 = vsyncpa [#allocation7 + $0x1], 0 }
   0x3   :  { %11 = vsyncpa [#allocation5], 0 }
   0x4   :  { %13 = vsyncpa [#allocation5 + $0x1], 0  ;;  %s713_s9 = smov 0   ;;  %s715_s10 = smov 0  }
   0x5   :  { %s717_s11 = smov 0   ;;  %s719_s12 = smov 0  }
   0x6 LB: > { %s734_s13 = sadd.s32 4294967295, %s681_s12   ;;  %s467_s14 = sadd.s32 4294967294, %s681_s12   ;;  %s681_s12 = sphi %s719_s12, %s930_s12   ;;  %s677_s11 = sphi %s717_s11, %s929_s11   ;;  %s673_s10 = sphi %s715_s10, %s928_s10   ;;  %s669_s9 = sphi %s713_s9, %s927_s9  }
   0x7   : > { %p60_p0 = scmp.ne.s32.totalorder %s673_s10, %s669_s9  ;;  %p909_p1 = scmp.eq.s32.totalorder %s734_s13, 0 }
   0x8   : > { %p90_p3 = scmp.eq.s32.totalorder %s467_s14, 1  ;;  %p468_p5 = scmp.ge.s32.totalorder %s681_s12, 1 }
   0x9   : > { %p743_p4 = por %p909_p1, %p60_p0  ;;  %p97_p7 = scmp.lt.s32.totalorder %s681_s12, 3 }
   0xa   : > { %p748_p6 = por %p90_p3, %p60_p0  ;;  %s683_s18 = smov [#allocation3]  }
   0xb   : > { %s913_s15 = scalar_select %p743_p4, 1, 0 }
   0xc   : > { %s914_s16 = scalar_select %p748_p6, 1, 0 }
   0xd   : > { %p753_p8 = pnand %p468_p5, %p97_p7  ;;  %s109_s19 = sshll.u32 %s683_s18, 4  ;;  %s110_s19 = int_to_ptr.vmem [resolvable:$true] %s109_s19 }
   0xe   : > { %s767_s21 = sadd.s32 1, %s681_s12   ;;  %s47_s22 = sadd.s32 1, %s677_s11 }
   0xf   : > { %s915_s17 = scalar_select %p753_p8, 1, 0 }
  0x10   : > { %p498_p9 = pneg %p753_p8  ;;  %s44_s23 = ssub.s32 %s681_s12, %s767_s21 }
  0x11   : > { %s570_s24 = scalar_lea.vmem %s110_s19, 256  ;;  %p578_p5 = scmp.lt.s32.totalorder %s110_s19, %s110_s19 }
  0x12   : > { %p762_p11 = pnand %p498_p9, %p909_p1  ;;  %p571_p13 = scmp.ne.s32.totalorder %s110_s19, %s570_s24 }
  0x13   : > { %p579_p7 = scmp.lt.s32.totalorder %s570_s24, %s570_s24 }
  0x14   : > { %p561_p12 = pneg %p762_p11 }
  0x15   : > { %p580_p10 = por %p579_p7, %p578_p5 }
  0x16   : > { %p573_p0 = pnand %p571_p13, %p561_p12 }
  0x18   : > { %p574_p3 = pneg %p573_p0 }
  0x1a   : > { %p581_p2 = pnand %p580_p10, %p574_p3 }
  0x1c   : > { %584 = shalt.err (!%p581_p2)
}
  0x1d   : > { %s684_s25 = smov 128   ;;  %s685_s26 = smov 8  }
  0x1e   : > { %501 = dma.hbm_to_vmem [thread:$0]  (!%p762_p11), %s906_s0, 256, %s110_s19, [#allocation4], %s684_s25, %s684_s25, %s685_s26  }
  0x1f   : > { %p45_p2 = scmp.eq.s32.totalorder %s44_s23, 0  ;;  %p54_p9 = scmp.ne.s32.totalorder %s677_s11, %s673_s10 }
  0x20   : > { %p55_p10 = scmp.eq.s32.totalorder %s681_s12, 0  ;;  %p511_p12 = scmp.lt.s32.totalorder %s681_s12, 2 }
  0x21   : > { %s787_s29 = scalar_select %p45_p2, %s677_s11, %s47_s22  }
  0x22   : > { %p56_p13 = por %p55_p10, %p54_p9  ;;  %p917_p0 = scmp.eq.s32.totalorder %s734_s13, 1 }
  0x23   : > { %s123_s3 = sand.u32 1, %s677_s11   ;;  %s487_s4 = smul.u32 768, %s681_s12 }
  0x24   : > { %p791_p3 = por %p917_p0, %p54_p9  ;;  %s486_s5 = smul.u32 48, %s123_s3 }
  0x25   : > { %p797_p5 = pnand %p511_p12, %p56_p13  ;;  %s804_s14 = scalar_lea.hbm %s907_s1, %s487_s4 }
  0x26   : > { %s918_s30 = scalar_select %p791_p3, 1, 0 }
  0x27   : > { %s127_s18 = scalar_lea.vmem [#allocation6], %s486_s5  ;;  %s808_s20 = scalar_lea.sflag [#allocation7], %s123_s3 }
  0x28   : > { %s134_s19 = sshll.u32 %s127_s18, 4  ;;  %s585_s22 = scalar_lea.hbm %s804_s14, 768  ;;  %s806_s19 = int_to_ptr.vmem [resolvable:$true] %s134_s19 }
  0x29   : > { %p586_p11 = scmp.ne.s32.totalorder %s804_s14, %s585_s22  ;;  %p587_p7 = pneg %p797_p5 }
  0x2a   : > { %s590_s27 = scalar_lea.hbm %s907_s1, 1536  ;;  %p591_p10 = scmp.lt.s32.totalorder %s804_s14, %s907_s1 }
  0x2b   : > { %p588_p2 = pnand %p587_p7, %p586_p11  ;;  %p592_p12 = scmp.lt.s32.totalorder %s590_s27, %s585_s22 }
  0x2d   : > { %p589_p9 = pneg %p588_p2  ;;  %p593_p13 = por %p592_p12, %p591_p10 }
  0x2f   : > { %p594_p0 = pnand %p593_p13, %p589_p9 }
  0x31   : > { %597 = shalt.err (!%p594_p0)
}
  0x32   : > { %s598_s3 = scalar_lea.vmem %s806_s19, 768  ;;  %s686_s5 = smov [#allocation6]  }
  0x33   : > { %p599_p1 = scmp.ne.s32.totalorder %s806_s19, %s598_s3  ;;  %s603_s7 = sshll.u32 %s686_s5, 4  ;;  %s604_s7 = int_to_ptr.vmem [resolvable:$false] %s603_s7 }
  0x34   : > { %s605_s8 = scalar_lea.vmem %s604_s7, 1536  ;;  %p606_p2 = scmp.lt.s32.totalorder %s806_s19, %s604_s7 }
  0x35   : > { %p601_p6 = pnand %p599_p1, %p587_p7  ;;  %p607_p3 = scmp.lt.s32.totalorder %s605_s8, %s598_s3 }
  0x37   : > { %p602_p11 = pneg %p601_p6  ;;  %p608_p4 = por %p607_p3, %p606_p2 }
  0x39   : > { %p609_p8 = pnand %p608_p4, %p602_p11 }
  0x3b   : > { %612 = shalt.err (!%p609_p8)
}
  0x3c   : > { %505 = dma.hbm_to_vmem [thread:$0]  (!%p797_p5), %s804_s14, 768, %s806_s19, %s808_s20, %s684_s25, %s684_s25, %s685_s26  }
  0x3d   : > { %p920_p1 = scmp.ne.s32.totalorder %s915_s17, 0 }
  0x3e   : > { %p921_p6 = scmp.eq.s32.totalorder (!%p920_p1), %s734_s13, 0 }
  0x3f   : > { %146 = sbr.rel (%p920_p1) target bundleno = 479 (0x1df), region = 28 }
  0x44   : > { %656 = dma.done.wait (%p921_p6), [#allocation4], 256   ;;  %p922_p7 = pmov %p921_p6 }
  0x45   : > { %s839_s18 = sand.u32 1, %s673_s10   ;;  %p923_p4 = scmp.ne.s32.totalorder %s913_s15, 0 }
  0x46   : > { %658 = vsyncadd (%p922_p7), [#allocation4], 4294967040  ;;  %s488_s6 = smul.u32 48, %s839_s18  ;;  %s153_s22 = scalar_lea.sflag [#allocation7], %s839_s18 }
  0x48   : > { %s156_s25 = scalar_lea.vmem [#allocation6], %s488_s6 }
  0x49   : > { %660 = dma.done.wait (%p923_p4), %s153_s22, 768  }
  0x4a   : > { %662 = vsyncadd (%p923_p4), %s153_s22, 4294966528  ;;  %vm177_vm0 = vcmask 441344   ;;  %v687_v0 = vmov 0.0   ;;  %vm180_vm1 = vcmask 435200   ;;  %v474_v1 = vld [vmem:[%s156_s25 + $0x10] sm:$0xff]  ;;  %v182_v2 = vld [vmem:[%s156_s25] sm:$0xff]  ;;  %v227_v19 = vlaneseq }
  0x4b   : > { %178 = vst.msk [vmem:[#allocation2] sm:$0xff] %vm177_vm0, %v687_v0  ;;  %179 = vst.msk [vmem:[#allocation2 + $0x8] sm:$0xff] %vm177_vm0, %v687_v0  ;;  %s688_s17 = smov 19   ;;  %s689_s26 = smov 1   ;;  %v475_v3 = vld [vmem:[%s156_s25 + $0x18] sm:$0xff]  ;;  %v183_v4 = vld [vmem:[%s156_s25 + $0x8] sm:$0xff] }
  0x4c   : > { %181 = vst.msk [vmem:[#allocation2 + $0x10] sm:$0x3] %vm180_vm1, %v687_v0  ;;  %200 = vrot.lane.b32.xlu1 %v474_v1, %s688_s17  ;;  %186 = vrot.lane.b32.xlu0 %v182_v2, %s689_s26  ;;  %v477_v5 = vld [vmem:[%s156_s25 + $0x28] sm:$0xff]  ;;  %v476_v6 = vld [vmem:[%s156_s25 + $0x20] sm:$0xff]  ;;  %s690_s15 = smov 37   ;;  %vm192_vm2 = vcmask 138248  }
  0x4d   : > { %vm206_vm3 = vcmask 285848   ;;  %vm220_vm4 = vcmask 433448   ;;  %s691_s14 = smov 127   ;;  %s692_s19 = smov 126   ;;  %v228_v20 = vshrl.u32 %v227_v19, 7  ;;  %v223_v23 = vld [vmem:[#allocation3] sm:$0xff] }
  0x4e   : > { %vm345_vm5 = vcmask 130048   ;;  %s176_s20 = scalar_lea.vmem [#allocation8], %s488_s6  ;;  %s693_s23 = smov 110  }
  0x4f   : > { %v237_v21 = vsub.s32 1, %v228_v20  ;;  %v229_v22 = vsub.s32 0, %v228_v20  ;;  %v253_v25 = vsub.s32 2, %v228_v20  ;;  %v269_v27 = vsub.s32 3, %v228_v20  ;;  %s694_s24 = smov 92   ;;  %s382_s27 = sshll.u32 %s176_s20, 4  ;;  %s854_s27 = int_to_ptr.vmem [resolvable:$true] %s382_s27 }
  0x50   : > { %202 = vrot.lane.b32.xlu1 %v475_v3, %s688_s17  ;;  %188 = vrot.lane.b32.xlu0 %v183_v4, %s689_s26  ;;  %v277_v30 = vsub.s32 4, %v228_v20  ;;  %v293_v40 = vsub.s32 5, %v228_v20  ;;  %v309_v45 = vsub.s32 6, %v228_v20  ;;  %v317_v53 = vsub.s32 7, %v228_v20  ;;  %s489_s28 = smul.u32 768, %s734_s13  ;;  %s369_s13 = scalar_lea.sflag [#allocation5], %s839_s18 }
  0x51   : > { %v238_v24 = vrot.slane %v223_v23, %v237_v21  ;;  %v230_v26 = vrot.slane %v223_v23, %v229_v22  ;;  %v254_v33 = vrot.slane %v223_v23, %v253_v25  ;;  %v270_v36 = vrot.slane %v223_v23, %v269_v27  ;;  %s613_s7 = scalar_lea.vmem %s854_s27, 768  ;;  %p924_p3 = scmp.ne.s32.totalorder %s918_s30, 0 }
  0x52   : > { %v278_v39 = vrot.slane %v223_v23, %v277_v30  ;;  %v294_v52 = vrot.slane %v223_v23, %v293_v40  ;;  %v310_v58 = vrot.slane %v223_v23, %v309_v45  ;;  %v318_v61 = vrot.slane %v223_v23, %v317_v53  ;;  %s861_s5 = scalar_lea.hbm %s908_s2, %s489_s28  ;;  %p614_p8 = scmp.ne.s32.totalorder %s854_s27, %s613_s7 }
  0x53   : > { %s695_s8 = smov [#allocation8]  }
  0x54   : > { %216 = vrot.lane.b32.xlu1 %v477_v5, %s690_s15  ;;  %214 = vrot.lane.b32.xlu0 %v476_v6, %s690_s15  ;;  %p615_p5 = pnand %p614_p8, %p924_p3  ;;  %s617_s6 = sshll.u32 %s695_s8, 4  ;;  %s618_s6 = int_to_ptr.vmem [resolvable:$false] %s617_s6 }
  0x55   : > { %s619_s22 = scalar_lea.vmem %s618_s6, 1536  ;;  %p620_p10 = scmp.lt.s32.totalorder %s854_s27, %s618_s6 }
  0x56   : > { %p616_p9 = pneg %p615_p5  ;;  %p621_p12 = scmp.lt.s32.totalorder %s619_s22, %s613_s7 }
  0x58   : > { %p622_p13 = por %p621_p12, %p620_p10 }
  0x5a   : > { %p623_p0 = pnand %p622_p13, %p616_p9 }
  0xbe   : > { %v201_v7 = vpop.permute.xlu1 %200  ;;  %v187_v8 = vpop.permute.xlu0 %186 }
  0xbf   : > { %193 = vst.msk [vmem:[#allocation2 + $0x1] sm:$0xff] %vm192_vm2, %v187_v8 }
  0xc0   : > { %207 = vst.msk [vmem:[#allocation2 + $0x1] sm:$0xff] %vm206_vm3, %v201_v7 }
  0xc2   : > { %v203_v9 = vpop.permute.xlu1 %202  ;;  %v189_v10 = vpop.permute.xlu0 %188 }
  0xc3   : > { %194 = vst.msk [vmem:[#allocation2 + $0x9] sm:$0xff] %vm192_vm2, %v189_v10 }
  0xc4   : > { %208 = vst.msk [vmem:[#allocation2 + $0x9] sm:$0xff] %vm206_vm3, %v203_v9 }
  0xc6   : > { %v217_v11 = vpop.permute.xlu1 %216  ;;  %v215_v12 = vpop.permute.xlu0 %214 }
  0xc7   : > { %222 = vst.msk [vmem:[#allocation2 + $0x9] sm:$0xff] %vm220_vm4, %v217_v11  ;;  %221 = vst.msk [vmem:[#allocation2 + $0x1] sm:$0xff] %vm220_vm4, %v215_v12  ;;  %v478_v12 = vld [vmem:[#allocation3 + $0x8] ss:$0 sm:$0xff] }
  0xce   : > { %v226_v13 = vld [vmem:[#allocation2 + $0x8] sm:$0xff]  ;;  %v225_v14 = vld [vmem:[#allocation2] sm:$0xff] }
  0xcf   : > { %243 = vrot.lane.b32.xlu1 %v226_v13, %s691_s14  ;;  %241 = vrot.lane.b32.xlu0 %v225_v14, %s691_s14  ;;  %v266_v15 = vld [vmem:[#allocation2 + $0x9] sm:$0xff]  ;;  %v265_v16 = vld [vmem:[#allocation2 + $0x1] sm:$0xff]  ;;  %v232_v34 = vmul.f32 %v230_v26, %v226_v13  ;;  %v231_v35 = vmul.f32 %v230_v26, %v225_v14 }
  0xd0   : > { %v306_v17 = vld [vmem:[#allocation2 + $0xa] sm:$0xff]  ;;  %v305_v18 = vld [vmem:[#allocation2 + $0x2] sm:$0xff]  ;;  %v272_v46 = vmul.f32 %v270_v36, %v266_v15  ;;  %v271_v47 = vmul.f32 %v270_v36, %v265_v16 }
  0xd1   : > { %v312_v2 = vmul.f32 %v310_v58, %v306_v17  ;;  %v311_v3 = vmul.f32 %v310_v58, %v305_v18 }
  0xd3   : > { %257 = vrot.lane.b32.xlu1 %v226_v13, %s692_s19  ;;  %255 = vrot.lane.b32.xlu0 %v225_v14, %s692_s19 }
  0xd7   : > { %283 = vrot.lane.b32.xlu1 %v266_v15, %s691_s14  ;;  %281 = vrot.lane.b32.xlu0 %v265_v16, %s691_s14 }
  0xdb   : > { %297 = vrot.lane.b32.xlu1 %v266_v15, %s692_s19  ;;  %295 = vrot.lane.b32.xlu0 %v265_v16, %s692_s19 }
  0xdf   : > { %323 = vrot.lane.b32.xlu1 %v306_v17, %s691_s14  ;;  %321 = vrot.lane.b32.xlu0 %v305_v18, %s691_s14 }
  0xe3   : > { %337 = vrot.lane.b32.xlu1 %v306_v17, %s692_s19  ;;  %335 = vrot.lane.b32.xlu0 %v305_v18, %s692_s19 }
 0x141   : > { %v244_v28 = vpop.permute.xlu1 %243  ;;  %v242_v29 = vpop.permute.xlu0 %241 }
 0x142   : > { %v248_v31 = vmul.f32 %v244_v28, %v238_v24  ;;  %v247_v32 = vmul.f32 %v242_v29, %v238_v24 }
 0x144   : > { %v250_v41 = vadd.f32 %v248_v31, %v232_v34  ;;  %v249_v42 = vadd.f32 %v247_v32, %v231_v35 }
 0x145   : > { %v258_v37 = vpop.permute.xlu1 %257  ;;  %v256_v38 = vpop.permute.xlu0 %255 }
 0x146   : > { %v262_v43 = vmul.f32 %v258_v37, %v254_v33  ;;  %v261_v44 = vmul.f32 %v256_v38, %v254_v33 }
 0x148   : > { %v264_v48 = vadd.f32 %v262_v43, %v250_v41  ;;  %v263_v49 = vadd.f32 %v261_v44, %v249_v42 }
 0x149   : > { %v284_v50 = vpop.permute.xlu1 %283  ;;  %v282_v51 = vpop.permute.xlu0 %281 }
 0x14a   : > { %v274_v54 = vadd.f32 %v272_v46, %v264_v48  ;;  %v288_v55 = vmul.f32 %v284_v50, %v278_v39  ;;  %v273_v56 = vadd.f32 %v271_v47, %v263_v49  ;;  %v287_v57 = vmul.f32 %v282_v51, %v278_v39 }
 0x14c   : > { %v290_v62 = vadd.f32 %v288_v55, %v274_v54  ;;  %v289_v63 = vadd.f32 %v287_v57, %v273_v56 }
 0x14d   : > { %v298_v59 = vpop.permute.xlu1 %297  ;;  %v296_v60 = vpop.permute.xlu0 %295 }
 0x14e   : > { %v302_v0 = vmul.f32 %v298_v59, %v294_v52  ;;  %v301_v1 = vmul.f32 %v296_v60, %v294_v52 }
 0x150   : > { %v304_v4 = vadd.f32 %v302_v0, %v290_v62  ;;  %v303_v5 = vadd.f32 %v301_v1, %v289_v63 }
 0x151   : > { %v324_v6 = vpop.permute.xlu1 %323  ;;  %v322_v7 = vpop.permute.xlu0 %321 }
 0x152   : > { %v314_v8 = vadd.f32 %v312_v2, %v304_v4  ;;  %v328_v9 = vmul.f32 %v324_v6, %v318_v61  ;;  %v313_v10 = vadd.f32 %v311_v3, %v303_v5  ;;  %v327_v11 = vmul.f32 %v322_v7, %v318_v61 }
 0x154   : > { %v330_v15 = vadd.f32 %v328_v9, %v314_v8  ;;  %v329_v16 = vadd.f32 %v327_v11, %v313_v10 }
 0x155   : > { %v338_v13 = vpop.permute.xlu1 %337  ;;  %v336_v14 = vpop.permute.xlu0 %335 }
 0x156   : > { %v342_v19 = vmul.f32 %v478_v12, %v338_v13  ;;  %v341_v20 = vmul.f32 %v478_v12, %v336_v14 }
 0x158   : > { %v344_v17 = vadd.f32 %v342_v19, %v330_v15  ;;  %v343_v18 = vadd.f32 %v341_v20, %v329_v16 }
 0x15a   : > { %347 = vst.msk [vmem:[%s176_s20 + $0x8] sm:$0xff] %vm345_vm5, %v344_v17  ;;  %346 = vst.msk [vmem:[%s176_s20] sm:$0xff] %vm345_vm5, %v343_v18  ;;  %352 = vrot.lane.b32.xlu1 %v344_v17, %s693_s23  ;;  %350 = vrot.lane.b32.xlu0 %v343_v18, %s693_s23 }
 0x15e   : > { %361 = vrot.lane.b32.xlu1 %v344_v17, %s694_s24  ;;  %359 = vrot.lane.b32.xlu0 %v343_v18, %s694_s24 }
 0x1cc   : > { %v353_v21 = vpop.permute.xlu1 %352  ;;  %v351_v22 = vpop.permute.xlu0 %350 }
 0x1cd   : > { %480 = vst.msk [vmem:[%s176_s20 + $0x18] sm:$0xff] %vm345_vm5, %v353_v21  ;;  %479 = vst.msk [vmem:[%s176_s20 + $0x10] sm:$0xff] %vm345_vm5, %v351_v22 }
 0x1d0   : > { %v362_v23 = vpop.permute.xlu1 %361  ;;  %v360_v24 = vpop.permute.xlu0 %359 }
 0x1d1   : > { %482 = vst.msk [vmem:[%s176_s20 + $0x28] sm:$0xff] %vm345_vm5, %v362_v23  ;;  %481 = vst.msk [vmem:[%s176_s20 + $0x20] sm:$0xff] %vm345_vm5, %v360_v24 }
 0x1d2   : > { %626 = shalt.err (!%p623_p0)
}
 0x1d3   : > { %s627_s25 = scalar_lea.hbm %s861_s5, 768  ;;  %s631_s15 = scalar_lea.hbm %s908_s2, 1536 }
 0x1d4   : > { %p628_p11 = scmp.ne.s32.totalorder %s861_s5, %s627_s25  ;;  %p632_p6 = scmp.lt.s32.totalorder %s861_s5, %s908_s2 }
 0x1d5   : > { %p633_p7 = scmp.lt.s32.totalorder %s631_s15, %s627_s25 }
 0x1d6   : > { %p629_p2 = pnand %p628_p11, %p924_p3 }
 0x1d7   : > { %p634_p4 = por %p633_p7, %p632_p6 }
 0x1d8   : > { %p630_p1 = pneg %p629_p2 }
 0x1da   : > { %p635_p8 = pnand %p634_p4, %p630_p1 }
 0x1dc   : > { %638 = shalt.err (!%p635_p8)
}
 0x1dd   : > { %s696_s20 = smov 128   ;;  %s697_s23 = smov 8  }
 0x1de   : > { %496 = dma.vmem_to_hbm [thread:$0]  (%p924_p3), %s854_s27, 768, %s861_s5, %s369_s13, %s696_s20, %s696_s20, %s697_s23  }
 0x1df PF: > { %s397_s24 = sand.u32 1, %s669_s9   ;;  %p925_p5 = scmp.ne.s32.totalorder %s914_s16, 0 }
 0x1e0   : > { %p926_p9 = scmp.ge.s32.totalorder %s681_s12, 2  ;;  %s398_s28 = scalar_lea.sflag [#allocation5], %s397_s24 }
 0x1e2   : > { %p507_p10 = pnand %p926_p9, %p925_p5 }
 0x1e4   : > { %p508_p12 = pneg %p507_p10 }
 0x1e6   : > { %664 = dma.done.wait (%p508_p12), %s398_s28, 768  }
 0x1e7   : > { %666 = vsyncadd (%p508_p12), %s398_s28, 4294966528  ;;  %p16_p13 = scmp.ge.s32.totalorder %s767_s21, 4   ;;  %s927_s9 = smov %s673_s10 }
 0x1e8   : > { %s928_s10 = smov %s677_s11  ;;  %s929_s11 = smov %s787_s29 }
 0x1e9   : > { %s930_s12 = smov %s767_s21  ;;  %18 = sbr.rel (!%p16_p13) target bundleno = 6 (0x6), region = 82 }
 0x1ee   :  { %403 = vsyncpa [#allocation4], 1 }
 0x1ef   :  { %405 = vsyncpa [#allocation4 + $0x1], 1 }
 0x1f0   :  { %406 = vsyncpa [#allocation7], 1 }
 0x1f1   :  { %408 = vsyncpa [#allocation7 + $0x1], 1 }
 0x1f2   :  { %409 = vsyncpa [#allocation5], 1 }
 0x1f3   :  { %411 = vsyncpa [#allocation5 + $0x1], 1 }

</bundles_post_ra>
